<compile_context>
chip_gen: v6e
topology: v6e:2x2x1
jax: 0.10.0
libtpu: 0.0.40
codegen_flags: <defaults>
</compile_context>

<pallas_src>
import functools

import jax
import jax.numpy as jnp
from jax.experimental import pallas as pl
from jax.experimental.pallas import tpu as pltpu


# --------------------------------------------------------------------------
# Pallas kernel: CAC loss reduction over (TB, C) tiles of the distance matrix.
# --------------------------------------------------------------------------
def _cac_loss_kernel(dist_ref, tgt_ref, out_ref,
                     anchor_acc, tuplet_acc, count_acc, *,
                     n_classes, alpha, batch, block_b):
    step = pl.program_id(0)

    @pl.when(step == 0)
    def _init():
        anchor_acc[...] = jnp.zeros_like(anchor_acc)
        tuplet_acc[...] = jnp.zeros_like(tuplet_acc)
        count_acc[...] = jnp.zeros_like(count_acc)

    d = dist_ref[...].astype(jnp.float32)      # (TB, C); bf16 input also supported
    tgt = tgt_ref[...]                         # (TB, 1) int32
    tb, C = d.shape

    col = jax.lax.broadcasted_iota(jnp.int32, (tb, C), 1)   # class index per lane
    row = jax.lax.broadcasted_iota(jnp.int32, (tb, 1), 0)   # row index inside tile

    # Mask rows of a partially-filled last tile (B not a multiple of TB).
    row_valid = (row + step * block_b) < batch               # (TB, 1) bool
    # is_known(target): target >= 0 (negative labels are OOD and ignored).
    known_row = jnp.logical_and(row_valid, tgt >= 0)         # (TB, 1) bool

    # d_true[i] = distances[i, target[i]] via one-hot select (per-row gather).
    onehot = col == tgt                                      # (TB, C) bool
    d_true = jnp.sum(jnp.where(onehot, d, 0.0), axis=1, keepdims=True)   # (TB, 1)

    # Anchor term: sum of d_true over known rows.
    anchor_part = jnp.sum(jnp.where(known_row, d_true, 0.0),
                          axis=0, keepdims=True)             # (1, 1)

    # Tuplet term.  NOTE: the reference module's `is_last_class` branch
    # compares target against n_classes (not n_classes - 1) and is dead code
    # for valid targets, so d_other is simply the first C-1 columns of every
    # known row.  Masks are folded into one select feeding exp: masked lanes
    # become -inf -> exp -> 0, so masked/garbage rows contribute log(1) = 0.
    z_mask = jnp.logical_and(known_row, col < (n_classes - 1))           # (TB, C)
    z = jnp.where(z_mask, jnp.minimum(d_true - d, 50.0), -jnp.inf)
    row_sum = jnp.sum(jnp.exp(z), axis=1, keepdims=True)                 # (TB, 1)
    tuplet_part = jnp.sum(jnp.log(1.0 + row_sum), axis=0, keepdims=True)  # (1, 1)

    count_part = jnp.sum(jnp.where(known_row, 1.0, 0.0),
                         axis=0, keepdims=True)              # (1, 1)

    anchor_acc[...] += anchor_part
    tuplet_acc[...] += tuplet_part
    count_acc[...] += count_part

    @pl.when(step == pl.num_programs(0) - 1)
    def _finalize():
        n_known = count_acc[...]
        denom = jnp.maximum(n_known, 1.0)
        loss = (alpha * anchor_acc[...] + tuplet_acc[...]) / denom
        out_ref[...] = jnp.where(n_known > 0.0, loss, 0.0)


def cac_loss(distances, target, *, n_classes, alpha=1.0, block_b=512):
    """CACLoss.forward(distances, target) -> scalar loss (OOD rows ignored)."""
    B, C = distances.shape
    assert C == n_classes

    # Batch tile: whole batch if it fits one block, otherwise a sublane
    # multiple.  Default 512 rows keeps double-buffered tiles well inside the
    # v7x 32 MiB scoped-VMEM budget while amortizing the ~0.35 us/step cost.
    if B <= block_b:
        tb = B
    else:
        tb = max(8, block_b - (block_b % 8))
    num_tiles = pl.cdiv(B, tb)

    # TODO(synk): feed target via scalar prefetch / lane-dense packing; the
    # (TB, 1) int32 VMEM block lane-pads to 128 lanes.
    # TODO(synk): for C << 128 repack k=128//C rows per vreg row (or fall back
    # to plain XLA); at C=8 the lane utilization is 8/128.
    # TODO(synk): on v7x, split the batch across both TensorCores with a
    # (2, tiles//2) grid, dimension_semantics=("parallel", "arbitrary") and
    # per-core partial sums combined in the wrapper.
    tgt2d = target.astype(jnp.int32).reshape(B, 1)

    kernel = functools.partial(
        _cac_loss_kernel,
        n_classes=n_classes, alpha=float(alpha), batch=B, block_b=tb)

    out = pl.pallas_call(
        kernel,
        out_shape=jax.ShapeDtypeStruct((1, 1), jnp.float32),
        grid_spec=pltpu.PrefetchScalarGridSpec(
            num_scalar_prefetch=0,
            grid=(num_tiles,),
            in_specs=[
                pl.BlockSpec((tb, C), lambda i: (i, 0)),
                pl.BlockSpec((tb, 1), lambda i: (i, 0)),
            ],
            out_specs=pl.BlockSpec((1, 1), lambda i: (0, 0)),
            scratch_shapes=[
                pltpu.VMEM((1, 1), jnp.float32),   # anchor_sum
                pltpu.VMEM((1, 1), jnp.float32),   # tuplet_sum
                pltpu.VMEM((1, 1), jnp.float32),   # n_known
            ],
        ),
        compiler_params=pltpu.CompilerParams(
            dimension_semantics=("arbitrary",)),
    )(distances, tgt2d)
    return out[0, 0]


# --------------------------------------------------------------------------
# Module-equivalent setup (plain-JAX glue)
# --------------------------------------------------------------------------
def init_centers(n_classes, magnitude=1.0):
    """nn.init.eye_ scaled by magnitude -> (C, C) anchor matrix."""
    return jnp.eye(n_classes, dtype=jnp.float32) * magnitude


def squared_distances(x, centers):
    """ClassCenters-style squared euclidean distances, shape (B, C).

    Uses ||x||^2 + ||c||^2 - 2 x @ c^T so the heavy term runs on the MXU
    instead of materializing a (B, C, D) broadcasted difference.
    """
    x = x.astype(jnp.float32)
    c = centers.astype(jnp.float32)
    x2 = jnp.sum(x * x, axis=-1, keepdims=True)                 # (B, 1)
    c2 = jnp.sum(c * c, axis=-1)[None, :]                       # (1, C)
    xc = jnp.dot(x, c.T, preferred_element_type=jnp.float32)    # (B, C) on MXU
    return jnp.maximum(x2 + c2 - 2.0 * xc, 0.0)


def _reference_loss(distances, target, n_classes, alpha):
    known = target >= 0
    if not bool(jnp.any(known)):
        return jnp.float32(0.0)
    d_known = distances[known]
    t_known = target[known]
    d_true = jnp.take_along_axis(d_known, t_known[:, None], axis=1)[:, 0]
    anchor = jnp.mean(d_true)
    d_other = d_known[:, : n_classes - 1]
    z = jnp.minimum(d_true[:, None] - d_other, 50.0)
    tuplet = jnp.mean(jnp.log(1.0 + jnp.sum(jnp.exp(z), axis=1)))
    return alpha * anchor + tuplet


if __name__ == "__main__":
    n_classes = 8
    batch = 24            # not a multiple of the 16-row demo tile -> tests masking
    magnitude = 1.0
    alpha = 1.0

    key = jax.random.PRNGKey(0)
    kx, kt = jax.random.split(key)

    centers = init_centers(n_classes, magnitude)                 # (C, C) anchors
    x = jax.random.normal(kx, (batch, n_classes), jnp.float32)
    target = jax.random.randint(kt, (batch,), 0, n_classes, jnp.int32)
    target = target.at[3].set(-1)                                # one OOD sample

    distances = squared_distances(x, centers)                    # (B, C)

    loss = cac_loss(distances, target, n_classes=n_classes, alpha=alpha,
                    block_b=16)                                  # 2 tiles, last partial
    loss = jax.block_until_ready(loss)

    ref = _reference_loss(distances, target, n_classes, alpha)
    assert jnp.allclose(loss, ref, rtol=1e-5, atol=1e-5), (loss, ref)

    print("KERNEL_OK")
</pallas_src>

<mosaic_0001>
module attributes {stable_mosaic.version = 11 : i64} {
  func.func @_cac_loss_kernel(%arg0: i32, %arg1: memref<16x8xf32, #tpu.memory_space<vmem>>, %arg2: memref<16x1xi32, #tpu.memory_space<vmem>>, %arg3: memref<1x1xf32, #tpu.memory_space<vmem>>, %arg4: memref<1x1xf32, #tpu.memory_space<vmem>>, %arg5: memref<1x1xf32, #tpu.memory_space<vmem>>, %arg6: memref<1x1xf32, #tpu.memory_space<vmem>>) attributes {dimension_semantics = [#tpu.dimension_semantics<arbitrary>], iteration_bounds = array<i64: 2>, scalar_prefetch = 0 : i64, scratch_operands = 3 : i64, tpu.core_type = #tpu.core_type<tc>, window_params = [{transform_indices = @transform_0, window_bounds = array<i64: 16, 8>}, {transform_indices = @transform_1, window_bounds = array<i64: 16, 1>}, {pipeline_mode = #tpu.pipeline_mode<synchronous>, transform_indices = @transform_2, window_bounds = array<i64: 1, 1>}]} {
    %c0_i32 = arith.constant 0 : i32
    %0 = arith.cmpi eq, %arg0, %c0_i32 : i32
    %1 = arith.extui %0 : i1 to i32
    %c0_i32_0 = arith.constant 0 : i32
    %2 = arith.cmpi ne, %1, %c0_i32_0 : i32
    scf.if %2 {
      %cst_29 = arith.constant 0.000000e+00 : f32
      %60 = vector.broadcast %cst_29 : f32 to vector<1x1xf32>
      %c0_30 = arith.constant 0 : index
      %c0_31 = arith.constant 0 : index
      %61 = vector.load %arg4[%c0_30, %c0_31] : memref<1x1xf32, #tpu.memory_space<vmem>>, vector<1x1xf32>
      tpu.vector_store %arg4[%c0_30, %c0_31], %60 {strides = array<i32>} : memref<1x1xf32, #tpu.memory_space<vmem>>, vector<1x1xf32>,
      %cst_32 = arith.constant 0.000000e+00 : f32
      %62 = vector.broadcast %cst_32 : f32 to vector<1x1xf32>
      %c0_33 = arith.constant 0 : index
      %c0_34 = arith.constant 0 : index
      %63 = vector.load %arg5[%c0_33, %c0_34] : memref<1x1xf32, #tpu.memory_space<vmem>>, vector<1x1xf32>
      tpu.vector_store %arg5[%c0_33, %c0_34], %62 {strides = array<i32>} : memref<1x1xf32, #tpu.memory_space<vmem>>, vector<1x1xf32>,
      %cst_35 = arith.constant 0.000000e+00 : f32
      %64 = vector.broadcast %cst_35 : f32 to vector<1x1xf32>
      %c0_36 = arith.constant 0 : index
      %c0_37 = arith.constant 0 : index
      %65 = vector.load %arg6[%c0_36, %c0_37] : memref<1x1xf32, #tpu.memory_space<vmem>>, vector<1x1xf32>
      tpu.vector_store %arg6[%c0_36, %c0_37], %64 {strides = array<i32>} : memref<1x1xf32, #tpu.memory_space<vmem>>, vector<1x1xf32>,
    } else {
    }
    %c0 = arith.constant 0 : index
    %c0_1 = arith.constant 0 : index
    %3 = vector.load %arg1[%c0, %c0_1] : memref<16x8xf32, #tpu.memory_space<vmem>>, vector<16x8xf32>
    %c0_2 = arith.constant 0 : index
    %c0_3 = arith.constant 0 : index
    %4 = vector.load %arg2[%c0_2, %c0_3] : memref<16x1xi32, #tpu.memory_space<vmem>>, vector<16x1xi32>
    %5 = tpu.iota {dimensions = array<i32: 1>} : vector<16x8xi32>
    %6 = tpu.iota {dimensions = array<i32: 0>} : vector<16x1xi32>
    %c16_i32 = arith.constant 16 : i32
    %7 = arith.muli %arg0, %c16_i32 : i32
    %8 = vector.broadcast %7 : i32 to vector<16x1xi32>
    %9 = arith.addi %6, %8 : vector<16x1xi32>
    %c24_i32 = arith.constant 24 : i32
    %10 = vector.broadcast %c24_i32 : i32 to vector<16x1xi32>
    %11 = arith.cmpi slt, %9, %10 : vector<16x1xi32>
    %c0_i32_4 = arith.constant 0 : i32
    %12 = vector.broadcast %c0_i32_4 : i32 to vector<16x1xi32>
    %13 = arith.cmpi sge, %4, %12 : vector<16x1xi32>
    %14 = arith.andi %11, %13 : vector<16x1xi1>
    %15 = vector.broadcast %4 : vector<16x1xi32> to vector<16x8xi32>
    %16 = arith.cmpi eq, %5, %15 : vector<16x8xi32>
    %cst = arith.constant 0.000000e+00 : f32
    %17 = vector.broadcast %cst : f32 to vector<16x8xf32>
    %18 = arith.select %16, %3, %17 : vector<16x8xi1>, vector<16x8xf32>
    %cst_5 = arith.constant dense<0.000000e+00> : vector<16xf32>
    %19 = vector.multi_reduction <add>, %18, %cst_5 [1] : vector<16x8xf32> to vector<16xf32>
    %20 = vector.shape_cast %19 : vector<16xf32> to vector<16x1xf32>
    %cst_6 = arith.constant 0.000000e+00 : f32
    %21 = vector.broadcast %cst_6 : f32 to vector<16x1xf32>
    %22 = arith.select %14, %20, %21 : vector<16x1xi1>, vector<16x1xf32>
    %cst_7 = arith.constant dense<0.000000e+00> : vector<1xf32>
    %23 = vector.multi_reduction <add>, %22, %cst_7 [0] : vector<16x1xf32> to vector<1xf32>
    %24 = vector.shape_cast %23 : vector<1xf32> to vector<1x1xf32>
    %c7_i32 = arith.constant 7 : i32
    %25 = vector.broadcast %c7_i32 : i32 to vector<16x8xi32>
    %26 = arith.cmpi slt, %5, %25 : vector<16x8xi32>
    %27 = vector.broadcast %14 : vector<16x1xi1> to vector<16x8xi1>
    %28 = arith.andi %27, %26 : vector<16x8xi1>
    %29 = vector.broadcast %20 : vector<16x1xf32> to vector<16x8xf32>
    %30 = arith.subf %29, %3 : vector<16x8xf32>
    %cst_8 = arith.constant 5.000000e+01 : f32
    %31 = vector.broadcast %cst_8 : f32 to vector<16x8xf32>
    %32 = arith.minimumf %30, %31 : vector<16x8xf32>
    %cst_9 = arith.constant 0xFF800000 : f32
    %33 = vector.broadcast %cst_9 : f32 to vector<16x8xf32>
    %34 = arith.select %28, %32, %33 : vector<16x8xi1>, vector<16x8xf32>
    %35 = math.exp %34 : vector<16x8xf32>
    %cst_10 = arith.constant dense<0.000000e+00> : vector<16xf32>
    %36 = vector.multi_reduction <add>, %35, %cst_10 [1] : vector<16x8xf32> to vector<16xf32>
    %37 = vector.shape_cast %36 : vector<16xf32> to vector<16x1xf32>
    %cst_11 = arith.constant 1.000000e+00 : f32
    %38 = vector.broadcast %cst_11 : f32 to vector<16x1xf32>
    %39 = arith.addf %38, %37 : vector<16x1xf32>
    %40 = math.log %39 : vector<16x1xf32>
    %cst_12 = arith.constant dense<0.000000e+00> : vector<1xf32>
    %41 = vector.multi_reduction <add>, %40, %cst_12 [0] : vector<16x1xf32> to vector<1xf32>
    %42 = vector.shape_cast %41 : vector<1xf32> to vector<1x1xf32>
    %cst_13 = arith.constant 1.000000e+00 : f32
    %cst_14 = arith.constant 0.000000e+00 : f32
    %43 = vector.broadcast %cst_13 : f32 to vector<16x1xf32>
    %44 = vector.broadcast %cst_14 : f32 to vector<16x1xf32>
    %45 = arith.select %14, %43, %44 : vector<16x1xi1>, vector<16x1xf32>
    %cst_15 = arith.constant dense<0.000000e+00> : vector<1xf32>
    %46 = vector.multi_reduction <add>, %45, %cst_15 [0] : vector<16x1xf32> to vector<1xf32>
    %47 = vector.shape_cast %46 : vector<1xf32> to vector<1x1xf32>
    %c0_16 = arith.constant 0 : index
    %c0_17 = arith.constant 0 : index
    %48 = vector.load %arg4[%c0_16, %c0_17] : memref<1x1xf32, #tpu.memory_space<vmem>>, vector<1x1xf32>
    %49 = arith.addf %48, %24 : vector<1x1xf32>
    %c0_18 = arith.constant 0 : index
    %c0_19 = arith.constant 0 : index
    %50 = vector.load %arg4[%c0_18, %c0_19] : memref<1x1xf32, #tpu.memory_space<vmem>>, vector<1x1xf32>
    tpu.vector_store %arg4[%c0_18, %c0_19], %49 {strides = array<i32>} : memref<1x1xf32, #tpu.memory_space<vmem>>, vector<1x1xf32>,
    %c0_20 = arith.constant 0 : index
    %c0_21 = arith.constant 0 : index
    %51 = vector.load %arg5[%c0_20, %c0_21] : memref<1x1xf32, #tpu.memory_space<vmem>>, vector<1x1xf32>
    %52 = arith.addf %51, %42 : vector<1x1xf32>
    %c0_22 = arith.constant 0 : index
    %c0_23 = arith.constant 0 : index
    %53 = vector.load %arg5[%c0_22, %c0_23] : memref<1x1xf32, #tpu.memory_space<vmem>>, vector<1x1xf32>
    tpu.vector_store %arg5[%c0_22, %c0_23], %52 {strides = array<i32>} : memref<1x1xf32, #tpu.memory_space<vmem>>, vector<1x1xf32>,
    %c0_24 = arith.constant 0 : index
    %c0_25 = arith.constant 0 : index
    %54 = vector.load %arg6[%c0_24, %c0_25] : memref<1x1xf32, #tpu.memory_space<vmem>>, vector<1x1xf32>
    %55 = arith.addf %54, %47 : vector<1x1xf32>
    %c0_26 = arith.constant 0 : index
    %c0_27 = arith.constant 0 : index
    %56 = vector.load %arg6[%c0_26, %c0_27] : memref<1x1xf32, #tpu.memory_space<vmem>>, vector<1x1xf32>
    tpu.vector_store %arg6[%c0_26, %c0_27], %55 {strides = array<i32>} : memref<1x1xf32, #tpu.memory_space<vmem>>, vector<1x1xf32>,
    %c1_i32 = arith.constant 1 : i32
    %57 = arith.cmpi eq, %arg0, %c1_i32 : i32
    %58 = arith.extui %57 : i1 to i32
    %c0_i32_28 = arith.constant 0 : i32
    %59 = arith.cmpi ne, %58, %c0_i32_28 : i32
    scf.if %59 {
      %c0_29 = arith.constant 0 : index
      %c0_30 = arith.constant 0 : index
      %60 = vector.load %arg6[%c0_29, %c0_30] : memref<1x1xf32, #tpu.memory_space<vmem>>, vector<1x1xf32>
      %cst_31 = arith.constant 1.000000e+00 : f32
      %61 = vector.broadcast %cst_31 : f32 to vector<1x1xf32>
      %62 = arith.maximumf %60, %61 : vector<1x1xf32>
      %c0_32 = arith.constant 0 : index
      %c0_33 = arith.constant 0 : index
      %63 = vector.load %arg4[%c0_32, %c0_33] : memref<1x1xf32, #tpu.memory_space<vmem>>, vector<1x1xf32>
      %cst_34 = arith.constant 1.000000e+00 : f32
      %64 = vector.broadcast %cst_34 : f32 to vector<1x1xf32>
      %65 = arith.mulf %64, %63 : vector<1x1xf32>
      %c0_35 = arith.constant 0 : index
      %c0_36 = arith.constant 0 : index
      %66 = vector.load %arg5[%c0_35, %c0_36] : memref<1x1xf32, #tpu.memory_space<vmem>>, vector<1x1xf32>
      %67 = arith.addf %65, %66 : vector<1x1xf32>
      %68 = arith.divf %67, %62 : vector<1x1xf32>
      %cst_37 = arith.constant 0.000000e+00 : f32
      %69 = vector.broadcast %cst_37 : f32 to vector<1x1xf32>
      %70 = arith.cmpf ogt, %60, %69 : vector<1x1xf32>
      %cst_38 = arith.constant 0.000000e+00 : f32
      %71 = vector.broadcast %cst_38 : f32 to vector<1x1xf32>
      %72 = arith.select %70, %68, %71 : vector<1x1xi1>, vector<1x1xf32>
      %c0_39 = arith.constant 0 : index
      %c0_40 = arith.constant 0 : index
      %73 = vector.load %arg3[%c0_39, %c0_40] : memref<1x1xf32, #tpu.memory_space<vmem>>, vector<1x1xf32>
      tpu.vector_store %arg3[%c0_39, %c0_40], %72 {strides = array<i32>} : memref<1x1xf32, #tpu.memory_space<vmem>>, vector<1x1xf32>,
    } else {
    }
    return
  }
  func.func @transform_0(%arg0: i32) -> (i32, i32) {
    %c0_i32 = arith.constant 0 : i32
    %c0_i32_0 = arith.constant 0 : i32
    return %arg0, %c0_i32 : i32, i32
  }
  func.func @transform_1(%arg0: i32) -> (i32, i32) {
    %c0_i32 = arith.constant 0 : i32
    %c0_i32_0 = arith.constant 0 : i32
    return %arg0, %c0_i32 : i32, i32
  }
  func.func @transform_2(%arg0: i32) -> (i32, i32) {
    %c0_i32 = arith.constant 0 : i32
    %c0_i32_0 = arith.constant 0 : i32
    %c0_i32_1 = arith.constant 0 : i32
    return %c0_i32, %c0_i32_0 : i32, i32
  }
}

</mosaic_0001>

<bundles_post_ra>
// kernel: tpu_custom_call.1
= control target key start
LH: loop header
LB: loop body
LE: loop exit
PB: predicated region body
PF: predicated region fallthrough
CT: control target
= control target key end

     0   :  { %7 = vsyncpa [#allocation6], 0  ;;  %s485_s9 = smov 0   ;;  %s558_s0 = inlined_call_operand.vmem [shape: f32[24,8], index: 0, kind: input, shape index: {}]   ;;  %s559_s1 = inlined_call_operand.vmem [shape: s32[24,1], index: 1, kind: input, shape index: {}]   ;;  %s560_s2 = inlined_call_operand.hbm [shape: f32[1,1], index: 2, kind: output, shape index: {}]  }
   0x1 LB: > { %s491_s10 = sadd.s32 4294967295, %s464_s9   ;;  %p388_p0 = scmp.ge.s32.totalorder %s464_s9, 1  ;;  %s464_s9 = sphi %s485_s9, %s13_s9  }
   0x2   : > { %p136_p1 = scmp.lt.s32.totalorder %s464_s9, 3 }
   0x4   : > { %p137_p2 = pnand %p388_p0, %p136_p1 }
   0x5   : > { %s389_s11 = sshll.u32 (!%p137_p2), %s491_s10, 1  ;;  %p393_p4 = scmp.ne.s32.totalorder (!%p137_p2), %s491_s10, 0 }
   0x6   : > { %140 = sbr.rel (%p137_p2) target bundleno = 523 (0x20b), region = 28  ;;  %p171_p3 = scmp.lt.s32.totalorder (!%p137_p2), %s389_s11, 2 }
   0xb   : > { %s566_s11 = smov (!%p171_p3, %s389_s11), 2  ;;  %197 = sbr.rel (%p393_p4) target bundleno = 19 (0x13), region = 32 }
   0xc   : > { %s390_s12 = sshll.u32 %s566_s11, 3 }
   0xd   : > { %s499_s15 = scalar_lea.vmem %s558_s0, %s390_s12  ;;  %s188_s18 = scalar_lea.vmem %s559_s1, %s390_s12 }
  0x10   : > { %vm198_vm0 = vcmask 0   ;;  %v466_v0 = vmov 0.0  }
  0x11   : > { %199 = vst.msk [vmem:[#allocation2] sm:$0x1] %vm198_vm0, %v466_v0  ;;  %200 = vst.msk [vmem:[#allocation3] sm:$0x1] %vm198_vm0, %v466_v0 }
  0x12   : > { %201 = vst.msk [vmem:[#allocation4] sm:$0x1] %vm198_vm0, %v466_v0 }
  0x13 PF: > { %v204_v1 = vld [vmem:[%s188_s18] sm:$0xff]  ;;  %v206_v2 = vlaneseq  ;;  %s394_s19 = sshll.u32 %s491_s10, 4  ;;  %v467_v3 = vmov 0   ;;  %v205_v6 = vld [vmem:[%s188_s18 + $0x8] sm:$0xff]  ;;  %v468_v13 = vmov 0.0   ;;  %vm240_vm7 = vcmask 7168  }
  0x14   : > { %418 = vset.pattern.permute.xlu0 %v467_v3  ;;  %v212_v4 = vstv %s394_s19  ;;  %419 = vset.pattern.permute.xlu1 %v467_v3  ;;  %vm217_vm1 = vcmp.ge.s32.totalorder %v204_v1, 0  ;;  %vm218_vm3 = vcmp.ge.s32.totalorder %v205_v6, 0  ;;  %v202_v22 = vld [vmem:[%s499_s15] sm:$0xff]  ;;  %vm231_vm8 = vcmask 64512   ;;  %v203_v27 = vld [vmem:[%s499_s15 + $0x8] sm:$0xff]  ;;  %p395_p5 = scmp.ne.s32.totalorder %s491_s10, 1 }
  0x15   : > { %v209_v5 = vshrl.u32 %v206_v2, 7  ;;  %222 = vperm.xlu0 %418, %v204_v1   ;;  %v207_v20 = vand.u32 127, %v206_v2  ;;  %vm305_vm11 = vcmask 0  }
  0x17   : > { %v213_v7 = vadd.s32 %v212_v4, %v209_v5  ;;  %v210_v8 = vadd.s32 8, %v209_v5  ;;  %vm250_vm12 = vcmp.lt.s32.totalorder %v207_v20, 7 }
  0x18   : > { %v303_v59 = vld [vmem:[#allocation2] sm:$0x1] }
  0x19   : > { %vm215_vm2 = vcmp.lt.s32.totalorder %v213_v7, 24  ;;  %v214_v9 = vadd.s32 %v212_v4, %v210_v8  ;;  %225 = vperm.xlu0 %418, %v205_v6   ;;  %v310_v34 = vld [vmem:[#allocation4] sm:$0x1] }
  0x1a   : > { %vm506_vm4 = vmand %vm215_vm2, %vm217_vm1 }
  0x1b   : > { %vm216_vm5 = vcmp.lt.s32.totalorder %v214_v9, 24  ;;  %v251_v11 = vsel %vm506_vm4, 1, %v467_v3  ;;  %v292_v14 = vsel %vm506_vm4, 1.0, %v468_v13 }
  0x1c   : > { %vm512_vm6 = vmand %vm216_vm5, %vm218_vm3  ;;  %v294_v16 = vsel %vm240_vm7, %v292_v14, 0.0 }
  0x1d   : > { %254 = vperm.xlu0 %418, %v251_v11   ;;  %v293_v15 = vsel %vm512_vm6, 1.0, %v468_v13  ;;  %v252_v36 = vsel %vm512_vm6, 1, %v467_v3 }
  0x1e   : > { %v295_v17 = vsel %vm240_vm7, %v293_v15, 0.0 }
  0x1f   : > { %v296_v18 = vadd.f32 %v295_v17, %v294_v16  ;;  %v307_v16 = vld [vmem:[#allocation3] sm:$0x1] }
  0x21   : > { %v297_v19 = vrot.slane %v296_v18, 4 }
  0x23   : > { %v298_v21 = vadd.f32 %v297_v19, %v296_v18 }
  0x25   : > { %v299_v24 = vrot.slane %v298_v21, 2 }
  0x27   : > { %v300_v29 = vadd.f32 %v299_v24, %v298_v21 }
  0x29   : > { %v301_v32 = vrot.slane %v300_v29, 1 }
  0x2b   : > { %v302_v33 = vadd.f32 %v301_v32, %v300_v29 }
  0x2d   : > { %v311_v35 = vadd.f32 %v310_v34, %v302_v33 }
  0x2f   : > { %312 = vst.msk [vmem:[#allocation4] sm:$0x1] %vm305_vm11, %v311_v35 }
  0x90   : > { %v223_v23 = vpop.permute.xlu0 %222 }
  0x91   : > { %vm227_vm9 = vcmp.eq.s32.totalorder %v207_v20, %v223_v23 }
  0x92   : > { %v229_v25 = vsel %vm227_vm9, %v202_v22, 0.0 }
  0x93   : > { %v232_v26 = vsel %vm231_vm8, %v229_v25, 0.0 }
  0x94   : > { %v226_v28 = vpop.permute.xlu0 %225  ;;  %233 = vadd.xlane.f32.xlu1 %v232_v26 }
  0x95   : > { %vm228_vm10 = vcmp.eq.s32.totalorder %v207_v20, %v226_v28 }
  0x96   : > { %v230_v30 = vsel %vm228_vm10, %v203_v27, 0.0 }
  0x97   : > { %v235_v31 = vsel %vm231_vm8, %v230_v30, 0.0 }
  0x98   : > { %236 = vadd.xlane.f32.xlu1 %v235_v31  ;;  %v255_v37 = vpop.permute.xlu0 %254 }
  0x99   : > { %vm259_vm13 = vcmp.eq.s32.totalorder %v255_v37, 1 }
  0x9a   : > { %vm261_vm14 = vmand %vm259_vm13, %vm250_vm12 }
  0xa9   : > { %257 = vperm.xlu1 %419, %v252_v36  }
 0x11d   : > { %v234_v38 = vpop.xlane.xlu1 %233 }
 0x11e   : > { %v263_v39 = vsub.f32 %v234_v38, %v202_v22  ;;  %v238_v40 = vsel %vm506_vm4, %v234_v38, 0.0 }
 0x11f   : > { %v241_v46 = vsel %vm240_vm7, %v238_v40, 0.0 }
 0x120   : > { %v265_v41 = vmin.f32 %v263_v39, 50.0 }
 0x121   : > { %v237_v42 = vpop.xlane.xlu1 %236 }
 0x122   : > { %v267_v43 = vsel %vm261_vm14, %v265_v41, -inf  ;;  %v239_v44 = vsel %vm512_vm6, %v237_v42, 0.0  ;;  %v264_v45 = vsub.f32 %v237_v42, %v203_v27 }
 0x123   : > { %v269_v47 = vmul.f32 1.442695, %v267_v43  ;;  %v242_v48 = vsel %vm240_vm7, %v239_v44, 0.0 }
 0x124   : > { %v243_v49 = vadd.f32 %v242_v48, %v241_v46  ;;  %v266_v52 = vmin.f32 %v264_v45, 50.0 }
 0x125   : > { %420 = vpow2.f32 %v269_v47  ;;  %v258_v50 = vpop.permute.xlu1 %257 }
 0x126   : > { %v244_v51 = vrot.slane %v243_v49, 4  ;;  %vm260_vm15 = vcmp.eq.s32.totalorder %v258_v50, 1 }
 0x127   : > { %vm262_vm0 = vmand %vm260_vm15, %vm250_vm12 }
 0x128   : > { %v245_v53 = vadd.f32 %v244_v51, %v243_v49  ;;  %v268_v54 = vsel %vm262_vm0, %v266_v52, -inf }
 0x129   : > { %v271_v55 = vmul.f32 1.442695, %v268_v54 }
 0x12a   : > { %v246_v56 = vrot.slane %v245_v53, 2 }
 0x12b   : > { %422 = vpow2.f32 %v271_v55 }
 0x12c   : > { %v247_v57 = vadd.f32 %v246_v56, %v245_v53 }
 0x12e   : > { %v248_v58 = vrot.slane %v247_v57, 1 }
 0x130   : > { %v249_v60 = vadd.f32 %v248_v58, %v247_v57 }
 0x132   : > { %v421_v61 = vpop.eup %420  ;;  %v304_v62 = vadd.f32 %v303_v59, %v249_v60 }
 0x133   : > { %v273_v63 = vsel %vm231_vm8, %v421_v61, 0.0 }
 0x134   : > { %306 = vst.msk [vmem:[#allocation2] sm:$0x1] %vm305_vm11, %v304_v62  ;;  %274 = vadd.xlane.f32.xlu0 %v273_v63 }
 0x138   : > { %v423_v0 = vpop.eup %422 }
 0x139   : > { %v276_v1 = vsel %vm231_vm8, %v423_v0, 0.0 }
 0x13a   : > { %277 = vadd.xlane.f32.xlu1 %v276_v1 }
 0x1bd   : > { %v275_v2 = vpop.xlane.xlu0 %274 }
 0x1be   : > { %v279_v3 = vadd.f32 1.0, %v275_v2 }
 0x1c0   : > { %424 = vlog2.f32 %v279_v3 }
 0x1c3   : > { %v278_v4 = vpop.xlane.xlu1 %277 }
 0x1c4   : > { %v280_v5 = vadd.f32 1.0, %v278_v4 }
 0x1c6   : > { %426 = vlog2.f32 %v280_v5 }
 0x1cd   : > { %v425_v6 = vpop.eup %424 }
 0x1ce   : > { %v282_v8 = vmul.f32 0.6931472, %v425_v6 }
 0x1d3   : > { %v427_v7 = vpop.eup %426 }
 0x1d4   : > { %v284_v9 = vmul.f32 0.6931472, %v427_v7 }
 0x1d6   : > { %v285_v10 = vadd.f32 %v284_v9, %v282_v8 }
 0x1d8   : > { %v286_v11 = vrot.slane %v285_v10, 4 }
 0x1da   : > { %v287_v12 = vadd.f32 %v286_v11, %v285_v10 }
 0x1dc   : > { %v288_v13 = vrot.slane %v287_v12, 2 }
 0x1de   : > { %v289_v14 = vadd.f32 %v288_v13, %v287_v12 }
 0x1e0   : > { %v290_v15 = vrot.slane %v289_v14, 1 }
 0x1e2   : > { %v291_v17 = vadd.f32 %v290_v15, %v289_v14  ;;  %316 = sbr.rel (%p395_p5) target bundleno = 508 (0x1fc), region = 36 }
 0x1e4   : > { %v308_v18 = vadd.f32 %v307_v16, %v291_v17 }
 0x1e6   : > { %309 = vst.msk [vmem:[#allocation3] sm:$0x1] %vm305_vm11, %v308_v18 }
 0x1e7   : > { %v317_v19 = vld [vmem:[#allocation4] sm:$0x1]  ;;  %v319_v21 = vld [vmem:[#allocation2] sm:$0x1] }
 0x1e8   : > { %v318_v20 = vmax.f32 %v317_v19, 1.0  ;;  %vm324_vm1 = vcmp.gt.f32.partialorder %v317_v19, 0.0 }
 0x1ea   : > { %428 = vrcp.f32 %v318_v20 }
 0x1ed   : > { %v320_v22 = vld [vmem:[#allocation3] sm:$0x1] }
 0x1ee   : > { %v321_v23 = vadd.f32 %v320_v22, %v319_v21 }
 0x1f7   : > { %v429_v24 = vpop.eup %428 }
 0x1f8   : > { %v323_v25 = vmul.f32 %v429_v24, %v321_v23 }
 0x1fa   : > { %v325_v26 = vsel %vm324_vm1, %v323_v25, 0.0 }
 0x1fb   : > { %326 = vst.msk [vmem:[#allocation5] sm:$0x1] %vm305_vm11, %v325_v26 }
 0x1fc PF: > { %p404_p6 = scmp.eq.s32.totalorder %s491_s10, 1  ;;  %s469_s20 = smov [#allocation5]  }
 0x1fd   : > { %s334_s21 = sshll.u32 %s469_s20, 4  ;;  %s335_s21 = int_to_ptr.vmem [resolvable:$true] %s334_s21 }
 0x1fe   : > { %s430_s22 = scalar_lea.vmem %s335_s21, 16  ;;  %s436_s23 = scalar_lea.vmem %s335_s21, 32 }
 0x1ff   : > { %p431_p7 = scmp.ne.s32.totalorder %s335_s21, %s430_s22  ;;  %p437_p10 = scmp.lt.s32.totalorder %s335_s21, %s335_s21 }
 0x200   : > { %p438_p11 = scmp.lt.s32.totalorder %s436_s23, %s430_s22 }
 0x201   : > { %p432_p8 = pnand %p431_p7, %p404_p6 }
 0x202   : > { %p439_p12 = por %p438_p11, %p437_p10 }
 0x203   : > { %p433_p9 = pneg %p432_p8 }
 0x205   : > { %p440_p13 = pnand %p439_p12, %p433_p9 }
 0x207   : > { %443 = shalt.err (!%p440_p13)
}
 0x208   : > { %401 = dma.vmem_to_hbm [thread:$0]  (%p404_p6), %s335_s21, 16, %s560_s2, [#allocation6]  }
 0x209   : > { %459 = dma.done.wait (%p404_p6), [#allocation6], 16  }
 0x20a   : > { %461 = vsyncadd (%p404_p6), [#allocation6], 4294967280 }
 0x20b PF: > { %s13_s9 = sadd.s32 1, %s464_s9  }
 0x20c   : > { %p10_p0 = scmp.ge.s32.totalorder %s13_s9, 4  }
 0x20e   :  { %12 = sbr.rel (!%p10_p0) target bundleno = 1 (0x1), region = 66 }
 0x213   :  { %347 = vsyncpa [#allocation6], 1 }
 0x214   :  { %349 = vsyncpa [#allocation6 + $0x1], 1 }

</bundles_post_ra>
